<compile_context>
chip_gen: v5e
topology: v5e:2x2
jax: 0.10.0
libtpu: 0.0.40
codegen_flags: <defaults>
</compile_context>

<pallas_src>
import functools

import jax
import jax.numpy as jnp
from jax.experimental import pallas as pl
from jax.experimental.pallas import tpu as pltpu

_LANES = 128


def _round_up(x, m):
    return (x + m - 1) // m * m


def _huber_kernel(yp_ref, yt_ref, out_ref, *, delta, inv_numel):
    i = pl.program_id(0)

    d = yp_ref[...].astype(jnp.float32) - yt_ref[...].astype(jnp.float32)
    ad = jnp.abs(d)
    square_h = 0.5 * d * d
    linear_h = delta * ad - 0.5 * delta * delta
    h = jnp.where(ad <= delta, square_h, linear_h)
    partial = jnp.sum(h)  # block-local reduction (XLU)

    @pl.when(i == 0)
    def _():
        out_ref[...] = jnp.zeros_like(out_ref)

    # Output block index is constant across the grid -> resident accumulator.
    out_ref[...] += partial

    @pl.when(i == pl.num_programs(0) - 1)
    def _():
        out_ref[...] = out_ref[...] * inv_numel


def huber_loss(y_pred, y_true, delta=0.5, block_rows=512):
    """Huber loss, scalar output, matching the PyTorch module."""
    assert y_pred.shape == y_true.shape
    numel = y_pred.size

    p = y_pred.reshape(-1)
    t = y_true.reshape(-1)

    # Lane-dense layout: (rows, 128), rows padded to a multiple of the block.
    rows = pl.cdiv(numel, _LANES)
    tb = _round_up(min(block_rows, _round_up(rows, 8)), 8)
    padded_rows = _round_up(rows, tb)
    padded = padded_rows * _LANES
    if padded != numel:
        # Pad BOTH inputs with zeros: diff==0 there, so the padded elements
        # contribute exactly 0 to the Huber sum (no mask needed).
        p = jnp.pad(p, (0, padded - numel))
        t = jnp.pad(t, (0, padded - numel))
    p = p.reshape(padded_rows, _LANES)
    t = t.reshape(padded_rows, _LANES)

    grid = (padded_rows // tb,)
    kernel = functools.partial(
        _huber_kernel, delta=float(delta), inv_numel=1.0 / float(numel)
    )

    out = pl.pallas_call(
        kernel,
        out_shape=jax.ShapeDtypeStruct((1, 1), jnp.float32),
        grid=grid,
        in_specs=[
            pl.BlockSpec((tb, _LANES), lambda i: (i, 0)),
            pl.BlockSpec((tb, _LANES), lambda i: (i, 0)),
        ],
        out_specs=pl.BlockSpec((1, 1), lambda i: (0, 0)),
        compiler_params=pltpu.CompilerParams(
            # Output block repeats across the grid (accumulator) -> arbitrary.
            dimension_semantics=("arbitrary",),
        ),
    )(p, t)
    return out[0, 0]


def _huber_reference(y_pred, y_true, delta=0.5):
    diff = jnp.abs(y_pred - y_true)
    square_h = 0.5 * (y_pred - y_true) ** 2
    linear_h = delta * jnp.abs(y_pred - y_true) - 0.5 * delta**2
    h = jnp.where(diff <= delta, square_h, linear_h)
    return jnp.sum(h) / y_pred.size


if __name__ == "__main__":
    key = jax.random.PRNGKey(0)
    k1, k2, k3, k4 = jax.random.split(key, 4)

    # Shape consistent with the module (arbitrary tensors): batch=2, ch=4, 16x16.
    shape = (2, 4, 16, 16)
    y_pred = jax.random.normal(k1, shape, dtype=jnp.float32)
    y_true = jax.random.normal(k2, shape, dtype=jnp.float32)

    loss = jax.block_until_ready(huber_loss(y_pred, y_true, delta=0.5))
    ref = _huber_reference(y_pred, y_true, 0.5)
    assert loss.shape == ()
    assert jnp.allclose(loss, ref, rtol=1e-5, atol=1e-6), (loss, ref)

    # Ragged size (not a multiple of 128) exercises the zero-pad path.
    shape2 = (3, 5, 7)
    yp2 = jax.random.normal(k3, shape2, dtype=jnp.float32)
    yt2 = jax.random.normal(k4, shape2, dtype=jnp.float32)
    loss2 = jax.block_until_ready(huber_loss(yp2, yt2, delta=0.5))
    ref2 = _huber_reference(yp2, yt2, 0.5)
    assert jnp.allclose(loss2, ref2, rtol=1e-5, atol=1e-6), (loss2, ref2)

    print("KERNEL_OK")
</pallas_src>

<mosaic_0001>
module attributes {stable_mosaic.version = 11 : i64} {
  func.func @_huber_kernel(%arg0: i32, %arg1: memref<16x128xf32, #tpu.memory_space<vmem>>, %arg2: memref<16x128xf32, #tpu.memory_space<vmem>>, %arg3: memref<1x1xf32, #tpu.memory_space<vmem>>) attributes {dimension_semantics = [#tpu.dimension_semantics<arbitrary>], iteration_bounds = array<i64: 1>, scalar_prefetch = 0 : i64, scratch_operands = 0 : i64, tpu.core_type = #tpu.core_type<tc>, window_params = [{transform_indices = @transform_0, window_bounds = array<i64: 16, 128>}, {transform_indices = @transform_1, window_bounds = array<i64: 16, 128>}, {pipeline_mode = #tpu.pipeline_mode<synchronous>, transform_indices = @transform_2, window_bounds = array<i64: 1, 1>}]} {
    %c0 = arith.constant 0 : index
    %c0_0 = arith.constant 0 : index
    %0 = vector.load %arg1[%c0, %c0_0] : memref<16x128xf32, #tpu.memory_space<vmem>>, vector<16x128xf32>
    %c0_1 = arith.constant 0 : index
    %c0_2 = arith.constant 0 : index
    %1 = vector.load %arg2[%c0_1, %c0_2] : memref<16x128xf32, #tpu.memory_space<vmem>>, vector<16x128xf32>
    %2 = arith.subf %0, %1 : vector<16x128xf32>
    %3 = math.absf %2 : vector<16x128xf32>
    %cst = arith.constant 5.000000e-01 : f32
    %4 = vector.broadcast %cst : f32 to vector<16x128xf32>
    %5 = arith.mulf %4, %2 : vector<16x128xf32>
    %6 = arith.mulf %5, %2 : vector<16x128xf32>
    %cst_3 = arith.constant 5.000000e-01 : f32
    %7 = vector.broadcast %cst_3 : f32 to vector<16x128xf32>
    %8 = arith.mulf %7, %3 : vector<16x128xf32>
    %cst_4 = arith.constant 1.250000e-01 : f32
    %9 = vector.broadcast %cst_4 : f32 to vector<16x128xf32>
    %10 = arith.subf %8, %9 : vector<16x128xf32>
    %cst_5 = arith.constant 5.000000e-01 : f32
    %11 = vector.broadcast %cst_5 : f32 to vector<16x128xf32>
    %12 = arith.cmpf ole, %3, %11 : vector<16x128xf32>
    %13 = arith.select %12, %6, %10 : vector<16x128xi1>, vector<16x128xf32>
    %14 = vector.shape_cast %13 : vector<16x128xf32> to vector<1x16x128xf32>
    %cst_6 = arith.constant dense<0.000000e+00> : vector<1xf32>
    %15 = vector.multi_reduction <add>, %14, %cst_6 [1, 2] : vector<1x16x128xf32> to vector<1xf32>
    %16 = vector.shape_cast %15 : vector<1xf32> to vector<1x1x1xf32>
    %17 = vector.extract %16[0, 0, 0] : f32 from vector<1x1x1xf32>
    %c0_i32 = arith.constant 0 : i32
    %18 = arith.cmpi eq, %arg0, %c0_i32 : i32
    %19 = arith.extui %18 : i1 to i32
    %c0_i32_7 = arith.constant 0 : i32
    %20 = arith.cmpi ne, %19, %c0_i32_7 : i32
    scf.if %20 {
      %cst_14 = arith.constant 0.000000e+00 : f32
      %28 = vector.broadcast %cst_14 : f32 to vector<1x1xf32>
      %c0_15 = arith.constant 0 : index
      %c0_16 = arith.constant 0 : index
      %29 = vector.load %arg3[%c0_15, %c0_16] : memref<1x1xf32, #tpu.memory_space<vmem>>, vector<1x1xf32>
      tpu.vector_store %arg3[%c0_15, %c0_16], %28 {strides = array<i32>} : memref<1x1xf32, #tpu.memory_space<vmem>>, vector<1x1xf32>,
    } else {
    }
    %c0_8 = arith.constant 0 : index
    %c0_9 = arith.constant 0 : index
    %21 = vector.load %arg3[%c0_8, %c0_9] : memref<1x1xf32, #tpu.memory_space<vmem>>, vector<1x1xf32>
    %22 = vector.broadcast %17 : f32 to vector<1x1xf32>
    %23 = arith.addf %21, %22 : vector<1x1xf32>
    %c0_10 = arith.constant 0 : index
    %c0_11 = arith.constant 0 : index
    %24 = vector.load %arg3[%c0_10, %c0_11] : memref<1x1xf32, #tpu.memory_space<vmem>>, vector<1x1xf32>
    tpu.vector_store %arg3[%c0_10, %c0_11], %23 {strides = array<i32>} : memref<1x1xf32, #tpu.memory_space<vmem>>, vector<1x1xf32>,
    %c0_i32_12 = arith.constant 0 : i32
    %25 = arith.cmpi eq, %arg0, %c0_i32_12 : i32
    %26 = arith.extui %25 : i1 to i32
    %c0_i32_13 = arith.constant 0 : i32
    %27 = arith.cmpi ne, %26, %c0_i32_13 : i32
    scf.if %27 {
      %c0_14 = arith.constant 0 : index
      %c0_15 = arith.constant 0 : index
      %28 = vector.load %arg3[%c0_14, %c0_15] : memref<1x1xf32, #tpu.memory_space<vmem>>, vector<1x1xf32>
      %cst_16 = arith.constant 4.8828125E-4 : f32
      %29 = vector.broadcast %cst_16 : f32 to vector<1x1xf32>
      %30 = arith.mulf %28, %29 : vector<1x1xf32>
      %c0_17 = arith.constant 0 : index
      %c0_18 = arith.constant 0 : index
      %31 = vector.load %arg3[%c0_17, %c0_18] : memref<1x1xf32, #tpu.memory_space<vmem>>, vector<1x1xf32>
      tpu.vector_store %arg3[%c0_17, %c0_18], %30 {strides = array<i32>} : memref<1x1xf32, #tpu.memory_space<vmem>>, vector<1x1xf32>,
    } else {
    }
    return
  }
  func.func @transform_0(%arg0: i32) -> (i32, i32) {
    %c0_i32 = arith.constant 0 : i32
    %c0_i32_0 = arith.constant 0 : i32
    return %arg0, %c0_i32 : i32, i32
  }
  func.func @transform_1(%arg0: i32) -> (i32, i32) {
    %c0_i32 = arith.constant 0 : i32
    %c0_i32_0 = arith.constant 0 : i32
    return %arg0, %c0_i32 : i32, i32
  }
  func.func @transform_2(%arg0: i32) -> (i32, i32) {
    %c0_i32 = arith.constant 0 : i32
    %c0_i32_0 = arith.constant 0 : i32
    %c0_i32_1 = arith.constant 0 : i32
    return %c0_i32, %c0_i32_0 : i32, i32
  }
}

</mosaic_0001>

<bundles_post_ra>
// kernel: tpu_custom_call.1
= control target key start
LH: loop header
LB: loop body
LE: loop exit
PB: predicated region body
PF: predicated region fallthrough
CT: control target
= control target key end

     0   :  { %7 = vsyncpa [#allocation3], 0  ;;  %s227_s0 = inlined_call_operand.hbm [shape: f32[16,128], index: 0, kind: input, shape index: {}]   ;;  %s228_s1 = inlined_call_operand.hbm [shape: f32[16,128], index: 1, kind: input, shape index: {}]   ;;  %s229_s2 = inlined_call_operand.hbm [shape: f32[1,1], index: 2, kind: output, shape index: {}]  }
   0x1   :  { %8 = vsyncpa [#allocation6], 0 }
   0x2   :  { %9 = vsyncpa [#allocation4], 0  ;;  %s14_s11 = sshll.u32 %s227_s0, 4  ;;  %s197_s12 = smov [#allocation2]   ;;  %s15_s11 = int_to_ptr.hbm [resolvable:$true] %s14_s11 }
   0x3   :  { %s16_s13 = sshll.u32 %s197_s12, 4  ;;  %s27_s16 = sshll.u32 %s228_s1, 4  ;;  %s17_s13 = int_to_ptr.vmem [resolvable:$true] %s16_s13  ;;  %s28_s16 = int_to_ptr.hbm [resolvable:$true] %s27_s16 }
   0x4   :  { %s198_s17 = smov 128   ;;  %s199_s18 = smov 8  }
   0x5   :  { %22 = dma.hbm_to_vmem [thread:$0]  %s15_s11, 256, %s17_s13, [#allocation3], %s198_s17, %s198_s17, %s199_s18  }
   0x6   :  { %s200_s19 = smov [#allocation5]  }
   0x7   :  { %s29_s20 = sshll.u32 %s200_s19, 4  ;;  %s30_s20 = int_to_ptr.vmem [resolvable:$true] %s29_s20 }
   0x8   :  { %35 = dma.hbm_to_vmem [thread:$0]  %s28_s16, 256, %s30_s20, [#allocation6], %s198_s17, %s198_s17, %s199_s18  }
   0x9   :  { %191 = dma.done.wait [#allocation3], 256  }
   0xa   :  { %192 = vsyncadd [#allocation3], 4294967040 }
   0xb   :  { %193 = dma.done.wait [#allocation6], 256  }
   0xc   :  { %194 = vsyncadd [#allocation6], 4294967040  ;;  %v44_v0 = vld [vmem:[#allocation2] sm:$0xff]  ;;  %v45_v1 = vld [vmem:[#allocation2 + $0x8] sm:$0xff]  ;;  %vm78_vm2 = vcmask 0   ;;  %v201_v26 = vmov 0.0  }
   0xd   :  { %v46_v2 = vld [vmem:[#allocation5] sm:$0xff]  ;;  %v47_v3 = vld [vmem:[#allocation5 + $0x8] sm:$0xff]  ;;  %79 = vst.msk [vmem:[#allocation7] sm:$0x1] %vm78_vm2, %v201_v26  ;;  %s202_s1 = smov [#allocation7]   ;;  %s98_s24 = sshll.u32 %s229_s2, 4  ;;  %s99_s24 = int_to_ptr.hbm [resolvable:$true] %s98_s24 }
   0xe   :  { %v48_v4 = vsub.f32 %v44_v0, %v46_v2  ;;  %v49_v5 = vsub.f32 %v45_v1, %v47_v3  ;;  %s96_s21 = sshll.u32 %s202_s1, 4  ;;  %s97_s21 = int_to_ptr.vmem [resolvable:$true] %s96_s21 }
  0x10   :  { %v50_v6 = vand.u32 2147483647, %v48_v4  ;;  %v52_v7 = vmul.f32 0.5, %v48_v4  ;;  %v51_v8 = vand.u32 2147483647, %v49_v5  ;;  %v53_v9 = vmul.f32 0.5, %v49_v5 }
  0x12   :  { %v54_v10 = vmul.f32 %v52_v7, %v48_v4  ;;  %v56_v11 = vmul.f32 0.5, %v50_v6  ;;  %v55_v12 = vmul.f32 %v53_v9, %v49_v5  ;;  %v57_v13 = vmul.f32 0.5, %v51_v8 }
  0x13   :  { %vm60_vm0 = vcmp.le.f32.partialorder %v50_v6, 0.5  ;;  %vm61_vm1 = vcmp.le.f32.partialorder %v51_v8, 0.5 }
  0x14   :  { %v109_v14 = vadd.f32 -0.125, %v56_v11  ;;  %v110_v15 = vadd.f32 -0.125, %v57_v13  ;;  %v80_v27 = vld [vmem:[#allocation7] sm:$0x1] }
  0x16   :  { %v62_v16 = vsel %vm60_vm0, %v54_v10, %v109_v14  ;;  %v63_v17 = vsel %vm61_vm1, %v55_v12, %v110_v15 }
  0x17   :  { %v64_v18 = vadd.f32 %v63_v17, %v62_v16 }
  0x19   :  { %65 = vadd.xlane.f32.xlu0 %v64_v18 }
  0x8c   :  { %v66_v19 = vpop.xlane.xlu0 %65 }
  0x8d   :  { %v67_v20 = vrot.slane %v66_v19, 4 }
  0x8f   :  { %v68_v21 = vadd.f32 %v67_v20, %v66_v19 }
  0x91   :  { %v69_v22 = vrot.slane %v68_v21, 2 }
  0x93   :  { %v70_v23 = vadd.f32 %v69_v22, %v68_v21 }
  0x95   :  { %v71_v24 = vrot.slane %v70_v23, 1 }
  0x97   :  { %v72_v25 = vadd.f32 %v71_v24, %v70_v23 }
  0x99   :  { %111 = vpush %v72_v25 }
  0xca   :  { %s112_s0 = spop %111 }
  0xcb   :  { %v81_v28 = vstv %s112_s0 }
  0xcc   :  { %v82_v29 = vadd.f32 %v81_v28, %v80_v27 }
  0xce   :  { %84 = vst.msk [vmem:[#allocation7] sm:$0x1] %vm78_vm2, %v82_v29 }
  0xd5   :  { %v88_v30 = vld [vmem:[#allocation7] sm:$0x1] }
  0xd6   :  { %v89_v31 = vmul.f32 0.00048828125, %v88_v30 }
  0xd8   :  { %90 = vst.msk [vmem:[#allocation7] sm:$0x1] %vm78_vm2, %v89_v31 }
  0xd9   :  { %101 = dma.vmem_to_hbm [thread:$0]  %s97_s21, 16, %s99_s24, [#allocation4]  }
  0xda   :  { %195 = dma.done.wait [#allocation4], 16  }
  0xdb   :  { %196 = vsyncadd [#allocation4], 4294967280 }
  0xdc   :  { %106 = vsyncpa [#allocation3], 1 }
  0xdd   :  { %107 = vsyncpa [#allocation6], 1 }
  0xde   :  { %108 = vsyncpa [#allocation4], 1 }

</bundles_post_ra>
